<compile_context>
chip_gen: v7x
topology: tpu7x:2x2x1
jax: 0.10.0
libtpu: 0.0.40
codegen_flags: <defaults>
</compile_context>

<pallas_src>
import functools

import jax
import jax.numpy as jnp
from jax import lax
from jax.experimental import pallas as pl
from jax.experimental.pallas import tpu as pltpu

_EPS = 1e-5
_LANE = 128


def _elu(x):
    # F.elu, alpha=1.0.  Clamp the exp argument: jnp.where evaluates both
    # branches and exp(large positive) would overflow on the unselected one.
    return jnp.where(x > 0, x, jnp.exp(jnp.minimum(x, 0.0)) - 1.0)


def _batchnorm_train(x, gamma, beta):
    # BatchNorm1d, training mode: per-feature batch mean and biased variance.
    mu = jnp.mean(x, axis=0, keepdims=True)
    var = jnp.mean((x - mu) ** 2, axis=0, keepdims=True)
    return (x - mu) * lax.rsqrt(var + _EPS) * gamma + beta


def _softmax_exact(x):
    # Exact denominator: the returned probability tables must sum to 1
    # (review correctness concern re: approx reciprocal).
    m = jnp.max(x, axis=1, keepdims=True)
    e = jnp.exp(x - m)
    return e / jnp.sum(e, axis=1, keepdims=True)


def _neg_u_select(act, u_off, n):
    # Broadcast -u (stored at lane `u_off` of the activation slab) across n
    # lanes with one tiny MXU dot -> no unaligned lane extraction/relayout.
    sel = -(lax.broadcasted_iota(jnp.int32, (_LANE, n), 0) == u_off).astype(jnp.float32)
    return jnp.dot(act, sel, preferred_element_type=jnp.float32)


def _categorical_sample(probs, neg_u, n):
    # Inverse-CDF sampling.  cdf = probs @ upper_tri (in-kernel iota constant);
    # sample = #{j : cdf_j < u}.  min() guards u close to 1 when the f32 CDF
    # sums to slightly less than 1 (do not remove).
    tri = (lax.broadcasted_iota(jnp.int32, (n, n), 0)
           <= lax.broadcasted_iota(jnp.int32, (n, n), 1)).astype(jnp.float32)
    z = jnp.dot(probs, tri, preferred_element_type=jnp.float32) + neg_u
    s = jnp.sum((z < 0.0).astype(jnp.int32), axis=1, keepdims=True)
    return jnp.minimum(s, n - 1)


def _dim_receiver_kernel(act_ref, const_ref, w_ref, out_ref, *,
                         n_dims, target_size, dim_size, u0_off, u1_off):
    act = act_ref[...]                         # (B, 128) f32 packed activations
    act_bf = act.astype(jnp.bfloat16)          # MXU operand (f32 accumulation)
    B = act.shape[0]

    # ---- constant slab rows (static offsets) ----
    b1      = const_ref[0:1, :]                # full 128-wide rows (zero-padded)
    bdc     = const_ref[1:2, 0:n_dims]
    gdim    = const_ref[2:3, 0:n_dims]
    betadim = const_ref[3:4, 0:n_dims]
    bt1     = const_ref[4:5, :]
    bt2     = const_ref[5:6, :]
    bt      = const_ref[6:7, 0:target_size]
    gt      = const_ref[7:8, 0:target_size]
    betat   = const_ref[8:9, 0:target_size]
    blkid   = const_ref[9:10, :]               # col block id (-1 beyond contexts)

    # ---------------- dim branch ----------------
    # cat([contexts, msg0]) @ w1 == slab @ W[0]  (W[0] zero-padded to 128x128)
    x1 = _elu(jnp.dot(act_bf, w_ref[0], preferred_element_type=jnp.float32) + b1)
    dim_logits = jnp.dot(x1.astype(jnp.bfloat16), w_ref[1],
                         preferred_element_type=jnp.float32)[:, :n_dims] + bdc
    dim_probs = _softmax_exact(_batchnorm_train(dim_logits, gdim, betadim))
    dim = _categorical_sample(dim_probs, _neg_u_select(act, u0_off, n_dims),
                              n_dims)                                   # (B,1) i32

    # ---- gather the chosen context block (torch.gather equivalent) ----
    # mask[b,c] = 1 iff column c belongs to block dim[b] (blkid row precomputed,
    # no per-call integer divide); gmat compacts the surviving block into the
    # first dim_size lanes with one matmul.
    mask = (blkid == dim.astype(jnp.float32)).astype(jnp.float32)       # (B,128)
    gmat = ((lax.broadcasted_iota(jnp.int32, (_LANE, _LANE), 0) % dim_size)
            == lax.broadcasted_iota(jnp.int32, (_LANE, _LANE), 1)).astype(jnp.float32)
    the_dim = jnp.dot(act * mask, gmat,
                      preferred_element_type=jnp.float32)               # (B,128)

    # ---------------- target branch ----------------
    # cat([the_dim, msg1]) @ wt1 == the_dim @ W[2] + slab @ W[3]  (split dot)
    h = (jnp.dot(the_dim.astype(jnp.bfloat16), w_ref[2],
                 preferred_element_type=jnp.float32)
         + jnp.dot(act_bf, w_ref[3], preferred_element_type=jnp.float32)
         + bt1)
    x2 = _elu(h)
    x2 = _elu(jnp.dot(x2.astype(jnp.bfloat16), w_ref[4],
                      preferred_element_type=jnp.float32) + bt2)
    t_logits = jnp.dot(x2.astype(jnp.bfloat16), w_ref[5],
                       preferred_element_type=jnp.float32)[:, :target_size] + bt
    t_probs = _softmax_exact(_batchnorm_train(t_logits, gt, betat))
    target = _categorical_sample(t_probs, _neg_u_select(act, u1_off, target_size),
                                 target_size)                           # (B,1) i32

    # ------------- single lane-dense packed output -------------
    pad = out_ref.shape[1] - (n_dims + target_size + 2)
    pieces = [dim_probs, t_probs,
              dim.astype(jnp.float32), target.astype(jnp.float32)]
    if pad:
        pieces.append(jnp.zeros((B, pad), jnp.float32))
    out_ref[...] = jnp.concatenate(pieces, axis=1)


def init_params(key, context_size, n_dims, target_size):
    """Deterministic parameter init matching the torch module's shapes."""
    dim_size = context_size // n_dims
    ks = jax.random.split(key, 5)

    def linear(k, fan_in, fan_out):
        k1, k2 = jax.random.split(k)
        bound = 1.0 / float(fan_in) ** 0.5
        w = jax.random.uniform(k1, (fan_in, fan_out), jnp.float32, -bound, bound)
        b = jax.random.uniform(k2, (1, fan_out), jnp.float32, -bound, bound)
        return w, b

    w1, b1 = linear(ks[0], context_size + n_dims, 64)          # dim1
    wdc, bdc = linear(ks[1], 64, n_dims)                       # dim_choice
    wt1, bt1 = linear(ks[2], dim_size + 2, 64)                 # target1
    wt2, bt2 = linear(ks[3], 64, 32)                           # target2
    wt, bt = linear(ks[4], 32, target_size)                    # target
    return dict(
        w1=w1, b1=b1, wdc=wdc, bdc=bdc,
        gdim=jnp.ones((1, n_dims), jnp.float32),
        betadim=jnp.zeros((1, n_dims), jnp.float32),
        wt1=wt1, bt1=bt1, wt2=wt2, bt2=bt2, wt=wt, bt=bt,
        gt=jnp.ones((1, target_size), jnp.float32),
        betat=jnp.zeros((1, target_size), jnp.float32),
    )


def _pack_inputs(params, contexts, msg0, msg1, uniforms, n_dims, target_size):
    """Host-side packing: 3 DMA-able slabs instead of 21 separate inputs."""
    B, C = contexts.shape
    dim_size = C // n_dims
    msg1_off = C + n_dims
    u0_off = msg1_off + 2
    u1_off = u0_off + 1
    assert u1_off < _LANE, "packed activation slab must fit in 128 lanes"

    # (B, 128) activation slab: contexts | msg0 | msg1 | uniforms | 0-pad
    act = jnp.zeros((B, _LANE), jnp.float32)
    act = act.at[:, :C].set(contexts)
    act = act.at[:, C:C + n_dims].set(msg0)
    act = act.at[:, msg1_off:msg1_off + 2].set(msg1)
    act = act.at[:, u0_off:u0_off + 2].set(uniforms)

    # (16, 128) constant slab: bias / gamma / beta rows + column block-id row.
    const = jnp.zeros((16, _LANE), jnp.float32)
    rows = [params['b1'], params['bdc'], params['gdim'], params['betadim'],
            params['bt1'], params['bt2'], params['bt'], params['gt'],
            params['betat']]
    for r, v in enumerate(rows):
        const = const.at[r, :v.shape[1]].set(v[0])
    lane = jnp.arange(_LANE)
    blkid = jnp.where(lane < C, lane // dim_size, -1).astype(jnp.float32)
    const = const.at[9, :].set(blkid)

    # (6, 128, 128) bf16 weight stack, each zero-padded to a full tile.
    W = jnp.zeros((6, _LANE, _LANE), jnp.float32)
    W = W.at[0, :C + n_dims, :64].set(params['w1'])                 # dim1
    W = W.at[1, :64, :n_dims].set(params['wdc'])                    # dim_choice
    W = W.at[2, :dim_size, :64].set(params['wt1'][:dim_size])       # target1 (dim part)
    W = W.at[3, msg1_off:msg1_off + 2, :64].set(params['wt1'][dim_size:])  # target1 (msg part)
    W = W.at[4, :64, :32].set(params['wt2'])                        # target2
    W = W.at[5, :32, :target_size].set(params['wt'])                # target
    W = W.astype(jnp.bfloat16)

    return act, const, W, dict(dim_size=dim_size, u0_off=u0_off, u1_off=u1_off)


def dim_receiver(params, contexts, msg0, msg1, sample_key, *, n_dims, target_size):
    B, C = contexts.shape
    # Host-side randomness (one draw covers both categorical samples).
    uniforms = jax.random.uniform(sample_key, (B, 2), jnp.float32)
    act, const, W, meta = _pack_inputs(params, contexts, msg0, msg1, uniforms,
                                       n_dims, target_size)

    kernel = functools.partial(
        _dim_receiver_kernel, n_dims=n_dims, target_size=target_size,
        dim_size=meta['dim_size'], u0_off=meta['u0_off'], u1_off=meta['u1_off'])

    vmem = pl.BlockSpec(memory_space=pltpu.MemorySpace.VMEM)
    packed = pl.pallas_call(
        kernel,
        out_shape=jax.ShapeDtypeStruct((B, _LANE), jnp.float32),
        in_specs=[vmem, vmem, vmem],
        out_specs=vmem,
    )(act, const, W)

    dim_probs = packed[:, :n_dims]
    target_probs = packed[:, n_dims:n_dims + target_size]
    dim = packed[:, n_dims + target_size].astype(jnp.int32)
    target = packed[:, n_dims + target_size + 1].astype(jnp.int32)

    # torch returns ([dim_dist, target_dist], [dim, target]); we return the
    # probability tables of those distributions plus the int32 samples.
    return (dim_probs, target_probs), (dim, target)


if __name__ == "__main__":
    context_size, n_dims, target_size = 16, 4, 8
    batch = 8  # BatchNorm1d (training mode) needs batch > 1

    key = jax.random.PRNGKey(0)
    kp, kc, k0, k1, ks = jax.random.split(key, 5)
    params = init_params(kp, context_size, n_dims, target_size)

    contexts = jax.random.normal(kc, (batch, context_size), jnp.float32)
    msg0 = jax.random.normal(k0, (batch, n_dims), jnp.float32)
    msg1 = jax.random.normal(k1, (batch, 2), jnp.float32)

    (dim_probs, target_probs), (dim, target) = dim_receiver(
        params, contexts, msg0, msg1, ks, n_dims=n_dims, target_size=target_size)
    jax.block_until_ready((dim_probs, target_probs, dim, target))

    assert dim_probs.shape == (batch, n_dims)
    assert target_probs.shape == (batch, target_size)
    assert dim.shape == (batch,) and target.shape == (batch,)
    # Exact softmax denominator -> tables sum to 1 up to f32 rounding.
    assert bool(jnp.all(jnp.abs(jnp.sum(dim_probs, axis=1) - 1.0) < 1e-4))
    assert bool(jnp.all(jnp.abs(jnp.sum(target_probs, axis=1) - 1.0) < 1e-4))
    assert bool(jnp.all((dim >= 0) & (dim < n_dims)))
    assert bool(jnp.all((target >= 0) & (target < target_size)))

    print("KERNEL_OK")
</pallas_src>

<mosaic_0001>
module attributes {stable_mosaic.version = 11 : i64} {
  func.func @_dim_receiver_kernel(%arg0: memref<8x128xf32, #tpu.memory_space<vmem>>, %arg1: memref<16x128xf32, #tpu.memory_space<vmem>>, %arg2: memref<6x128x128xbf16, #tpu.memory_space<vmem>>, %arg3: memref<8x128xf32, #tpu.memory_space<vmem>>) attributes {dimension_semantics = [], scalar_prefetch = 0 : i64, scratch_operands = 0 : i64, tpu.core_type = #tpu.core_type<tc>} {
    %c0 = arith.constant 0 : index
    %c0_0 = arith.constant 0 : index
    %0 = vector.load %arg0[%c0, %c0_0] : memref<8x128xf32, #tpu.memory_space<vmem>>, vector<8x128xf32>
    %1 = arith.truncf %0 : vector<8x128xf32> to vector<8x128xbf16>
    %c0_1 = arith.constant 0 : index
    %c0_2 = arith.constant 0 : index
    %2 = vector.load %arg1[%c0_1, %c0_2] : memref<16x128xf32, #tpu.memory_space<vmem>>, vector<1x128xf32>
    %c1 = arith.constant 1 : index
    %c0_3 = arith.constant 0 : index
    %3 = vector.load %arg1[%c1, %c0_3] : memref<16x128xf32, #tpu.memory_space<vmem>>, vector<1x4xf32>
    %c2 = arith.constant 2 : index
    %c0_4 = arith.constant 0 : index
    %4 = vector.load %arg1[%c2, %c0_4] : memref<16x128xf32, #tpu.memory_space<vmem>>, vector<1x4xf32>
    %c3 = arith.constant 3 : index
    %c0_5 = arith.constant 0 : index
    %5 = vector.load %arg1[%c3, %c0_5] : memref<16x128xf32, #tpu.memory_space<vmem>>, vector<1x4xf32>
    %c4 = arith.constant 4 : index
    %c0_6 = arith.constant 0 : index
    %6 = vector.load %arg1[%c4, %c0_6] : memref<16x128xf32, #tpu.memory_space<vmem>>, vector<1x128xf32>
    %c5 = arith.constant 5 : index
    %c0_7 = arith.constant 0 : index
    %7 = vector.load %arg1[%c5, %c0_7] : memref<16x128xf32, #tpu.memory_space<vmem>>, vector<1x128xf32>
    %c6 = arith.constant 6 : index
    %c0_8 = arith.constant 0 : index
    %8 = vector.load %arg1[%c6, %c0_8] : memref<16x128xf32, #tpu.memory_space<vmem>>, vector<1x8xf32>
    %c7 = arith.constant 7 : index
    %c0_9 = arith.constant 0 : index
    %9 = vector.load %arg1[%c7, %c0_9] : memref<16x128xf32, #tpu.memory_space<vmem>>, vector<1x8xf32>
    %c8 = arith.constant 8 : index
    %c0_10 = arith.constant 0 : index
    %10 = vector.load %arg1[%c8, %c0_10] : memref<16x128xf32, #tpu.memory_space<vmem>>, vector<1x8xf32>
    %c9 = arith.constant 9 : index
    %c0_11 = arith.constant 0 : index
    %11 = vector.load %arg1[%c9, %c0_11] : memref<16x128xf32, #tpu.memory_space<vmem>>, vector<1x128xf32>
    %c0_12 = arith.constant 0 : index
    %c0_13 = arith.constant 0 : index
    %c0_14 = arith.constant 0 : index
    %12 = vector.load %arg2[%c0_12, %c0_13, %c0_14] : memref<6x128x128xbf16, #tpu.memory_space<vmem>>, vector<1x128x128xbf16>
    %13 = vector.shape_cast %12 : vector<1x128x128xbf16> to vector<128x128xbf16>
    %cst = arith.constant dense<0.000000e+00> : vector<8x128xf32>
    %14 = tpu.matmul %1, %13, %cst {dimension_numbers = #tpu.dot_dimension_numbers<[1], [0], [0], [1], [0, 0, 1, 1], [], []>} : vector<8x128xbf16>, vector<128x128xbf16>, vector<8x128xf32> -> vector<8x128xf32>
    %15 = vector.broadcast %2 : vector<1x128xf32> to vector<8x128xf32>
    %16 = arith.addf %14, %15 : vector<8x128xf32>
    %cst_15 = arith.constant 0.000000e+00 : f32
    %17 = vector.broadcast %cst_15 : f32 to vector<8x128xf32>
    %18 = arith.cmpf ogt, %16, %17 : vector<8x128xf32>
    %cst_16 = arith.constant 0.000000e+00 : f32
    %19 = vector.broadcast %cst_16 : f32 to vector<8x128xf32>
    %20 = arith.minimumf %16, %19 : vector<8x128xf32>
    %21 = math.exp %20 : vector<8x128xf32>
    %cst_17 = arith.constant 1.000000e+00 : f32
    %22 = vector.broadcast %cst_17 : f32 to vector<8x128xf32>
    %23 = arith.subf %21, %22 : vector<8x128xf32>
    %24 = arith.select %18, %16, %23 : vector<8x128xi1>, vector<8x128xf32>
    %25 = arith.truncf %24 : vector<8x128xf32> to vector<8x128xbf16>
    %c1_18 = arith.constant 1 : index
    %c0_19 = arith.constant 0 : index
    %c0_20 = arith.constant 0 : index
    %26 = vector.load %arg2[%c1_18, %c0_19, %c0_20] : memref<6x128x128xbf16, #tpu.memory_space<vmem>>, vector<1x128x128xbf16>
    %27 = vector.shape_cast %26 : vector<1x128x128xbf16> to vector<128x128xbf16>
    %cst_21 = arith.constant dense<0.000000e+00> : vector<8x128xf32>
    %28 = tpu.matmul %25, %27, %cst_21 {dimension_numbers = #tpu.dot_dimension_numbers<[1], [0], [0], [1], [0, 0, 1, 1], [], []>} : vector<8x128xbf16>, vector<128x128xbf16>, vector<8x128xf32> -> vector<8x128xf32>
    %29 = vector.extract_strided_slice %28 {offsets = [0, 0], sizes = [8, 4], strides = [1, 1]} : vector<8x128xf32> to vector<8x4xf32>
    %30 = vector.broadcast %3 : vector<1x4xf32> to vector<8x4xf32>
    %31 = arith.addf %29, %30 : vector<8x4xf32>
    %cst_22 = arith.constant dense<0.000000e+00> : vector<4xf32>
    %32 = vector.multi_reduction <add>, %31, %cst_22 [0] : vector<8x4xf32> to vector<4xf32>
    %33 = vector.shape_cast %32 : vector<4xf32> to vector<1x4xf32>
    %cst_23 = arith.constant 8.000000e+00 : f32
    %34 = vector.broadcast %cst_23 : f32 to vector<1x4xf32>
    %35 = arith.divf %33, %34 : vector<1x4xf32>
    %36 = vector.broadcast %35 : vector<1x4xf32> to vector<8x4xf32>
    %37 = arith.subf %31, %36 : vector<8x4xf32>
    %38 = arith.mulf %37, %37 : vector<8x4xf32>
    %cst_24 = arith.constant dense<0.000000e+00> : vector<4xf32>
    %39 = vector.multi_reduction <add>, %38, %cst_24 [0] : vector<8x4xf32> to vector<4xf32>
    %40 = vector.shape_cast %39 : vector<4xf32> to vector<1x4xf32>
    %cst_25 = arith.constant 8.000000e+00 : f32
    %41 = vector.broadcast %cst_25 : f32 to vector<1x4xf32>
    %42 = arith.divf %40, %41 : vector<1x4xf32>
    %43 = vector.broadcast %35 : vector<1x4xf32> to vector<8x4xf32>
    %44 = arith.subf %31, %43 : vector<8x4xf32>
    %cst_26 = arith.constant 9.99999974E-6 : f32
    %45 = vector.broadcast %cst_26 : f32 to vector<1x4xf32>
    %46 = arith.addf %42, %45 : vector<1x4xf32>
    %47 = math.rsqrt %46 : vector<1x4xf32>
    %48 = vector.broadcast %47 : vector<1x4xf32> to vector<8x4xf32>
    %49 = arith.mulf %44, %48 : vector<8x4xf32>
    %50 = vector.broadcast %4 : vector<1x4xf32> to vector<8x4xf32>
    %51 = arith.mulf %49, %50 : vector<8x4xf32>
    %52 = vector.broadcast %5 : vector<1x4xf32> to vector<8x4xf32>
    %53 = arith.addf %51, %52 : vector<8x4xf32>
    %cst_27 = arith.constant dense<0xFF800000> : vector<8xf32>
    %54 = vector.multi_reduction <maximumf>, %53, %cst_27 [1] : vector<8x4xf32> to vector<8xf32>
    %55 = vector.shape_cast %54 : vector<8xf32> to vector<8x1xf32>
    %56 = vector.broadcast %55 : vector<8x1xf32> to vector<8x4xf32>
    %57 = arith.subf %53, %56 : vector<8x4xf32>
    %58 = math.exp %57 : vector<8x4xf32>
    %cst_28 = arith.constant dense<0.000000e+00> : vector<8xf32>
    %59 = vector.multi_reduction <add>, %58, %cst_28 [1] : vector<8x4xf32> to vector<8xf32>
    %60 = vector.shape_cast %59 : vector<8xf32> to vector<8x1xf32>
    %61 = vector.broadcast %60 : vector<8x1xf32> to vector<8x4xf32>
    %62 = arith.divf %58, %61 : vector<8x4xf32>
    %63 = tpu.iota {dimensions = array<i32: 0>} : vector<128x4xi32>
    %c22_i32 = arith.constant 22 : i32
    %64 = vector.broadcast %c22_i32 : i32 to vector<128x4xi32>
    %65 = arith.cmpi eq, %63, %64 : vector<128x4xi32>
    %66 = arith.extui %65 : vector<128x4xi1> to vector<128x4xi32>
    %67 = arith.sitofp %66 : vector<128x4xi32> to vector<128x4xf32>
    %cst_29 = arith.constant 0.000000e+00 : f32
    %68 = vector.broadcast %cst_29 : f32 to vector<128x4xf32>
    %69 = arith.subf %68, %67 : vector<128x4xf32>
    %cst_30 = arith.constant dense<0.000000e+00> : vector<8x4xf32>
    %70 = tpu.matmul %0, %69, %cst_30 {dimension_numbers = #tpu.dot_dimension_numbers<[1], [0], [0], [1], [0, 0, 1, 1], [], []>} : vector<8x128xf32>, vector<128x4xf32>, vector<8x4xf32> -> vector<8x4xf32>
    %71 = tpu.iota {dimensions = array<i32: 0>} : vector<4x4xi32>
    %72 = tpu.iota {dimensions = array<i32: 1>} : vector<4x4xi32>
    %73 = arith.cmpi sle, %71, %72 : vector<4x4xi32>
    %74 = arith.extui %73 : vector<4x4xi1> to vector<4x4xi32>
    %75 = arith.sitofp %74 : vector<4x4xi32> to vector<4x4xf32>
    %cst_31 = arith.constant dense<0.000000e+00> : vector<8x4xf32>
    %76 = tpu.matmul %62, %75, %cst_31 {dimension_numbers = #tpu.dot_dimension_numbers<[1], [0], [0], [1], [0, 0, 1, 1], [], []>} : vector<8x4xf32>, vector<4x4xf32>, vector<8x4xf32> -> vector<8x4xf32>
    %77 = arith.addf %76, %70 : vector<8x4xf32>
    %cst_32 = arith.constant 0.000000e+00 : f32
    %78 = vector.broadcast %cst_32 : f32 to vector<8x4xf32>
    %79 = arith.cmpf olt, %77, %78 : vector<8x4xf32>
    %80 = arith.extui %79 : vector<8x4xi1> to vector<8x4xi32>
    %cst_33 = arith.constant dense<0> : vector<8xi32>
    %81 = vector.multi_reduction <add>, %80, %cst_33 [1] : vector<8x4xi32> to vector<8xi32>
    %82 = vector.shape_cast %81 : vector<8xi32> to vector<8x1xi32>
    %c3_i32 = arith.constant 3 : i32
    %83 = vector.broadcast %c3_i32 : i32 to vector<8x1xi32>
    %84 = arith.minsi %82, %83 : vector<8x1xi32>
    %85 = arith.sitofp %84 : vector<8x1xi32> to vector<8x1xf32>
    %86 = vector.broadcast %11 : vector<1x128xf32> to vector<8x128xf32>
    %87 = vector.broadcast %85 : vector<8x1xf32> to vector<8x128xf32>
    %88 = arith.cmpf oeq, %86, %87 : vector<8x128xf32>
    %89 = arith.extui %88 : vector<8x128xi1> to vector<8x128xi32>
    %90 = arith.sitofp %89 : vector<8x128xi32> to vector<8x128xf32>
    %91 = tpu.iota {dimensions = array<i32: 0>} : vector<128x128xi32>
    %c4_i32 = arith.constant 4 : i32
    %c0_i32 = arith.constant 0 : i32
    %92 = arith.cmpi eq, %c4_i32, %c0_i32 : i32
    %c1_i32 = arith.constant 1 : i32
    %93 = arith.select %92, %c1_i32, %c4_i32 : i32
    %94 = vector.broadcast %93 : i32 to vector<128x128xi32>
    %95 = arith.remsi %91, %94 : vector<128x128xi32>
    %c0_i32_34 = arith.constant 0 : i32
    %96 = vector.broadcast %c0_i32_34 : i32 to vector<128x128xi32>
    %97 = arith.cmpi ne, %95, %96 : vector<128x128xi32>
    %c0_i32_35 = arith.constant 0 : i32
    %98 = vector.broadcast %c0_i32_35 : i32 to vector<128x128xi32>
    %99 = arith.cmpi slt, %95, %98 : vector<128x128xi32>
    %c0_i32_36 = arith.constant 0 : i32
    %100 = arith.cmpi slt, %93, %c0_i32_36 : i32
    %101 = vector.broadcast %100 : i1 to vector<128x128xi1>
    %102 = vector.broadcast %101 : vector<128x128xi1> to vector<128x128xi1>
    %103 = arith.xori %99, %102 : vector<128x128xi1>
    %104 = arith.andi %103, %97 : vector<128x128xi1>
    %105 = vector.broadcast %93 : i32 to vector<128x128xi32>
    %106 = arith.addi %95, %105 : vector<128x128xi32>
    %107 = arith.select %104, %106, %95 : vector<128x128xi1>, vector<128x128xi32>
    %108 = tpu.iota {dimensions = array<i32: 1>} : vector<128x128xi32>
    %109 = arith.cmpi eq, %107, %108 : vector<128x128xi32>
    %110 = arith.extui %109 : vector<128x128xi1> to vector<128x128xi32>
    %111 = arith.sitofp %110 : vector<128x128xi32> to vector<128x128xf32>
    %112 = arith.mulf %0, %90 : vector<8x128xf32>
    %cst_37 = arith.constant dense<0.000000e+00> : vector<8x128xf32>
    %113 = tpu.matmul %112, %111, %cst_37 {dimension_numbers = #tpu.dot_dimension_numbers<[1], [0], [0], [1], [0, 0, 1, 1], [], []>} : vector<8x128xf32>, vector<128x128xf32>, vector<8x128xf32> -> vector<8x128xf32>
    %114 = arith.truncf %113 : vector<8x128xf32> to vector<8x128xbf16>
    %c2_38 = arith.constant 2 : index
    %c0_39 = arith.constant 0 : index
    %c0_40 = arith.constant 0 : index
    %115 = vector.load %arg2[%c2_38, %c0_39, %c0_40] : memref<6x128x128xbf16, #tpu.memory_space<vmem>>, vector<1x128x128xbf16>
    %116 = vector.shape_cast %115 : vector<1x128x128xbf16> to vector<128x128xbf16>
    %cst_41 = arith.constant dense<0.000000e+00> : vector<8x128xf32>
    %117 = tpu.matmul %114, %116, %cst_41 {dimension_numbers = #tpu.dot_dimension_numbers<[1], [0], [0], [1], [0, 0, 1, 1], [], []>} : vector<8x128xbf16>, vector<128x128xbf16>, vector<8x128xf32> -> vector<8x128xf32>
    %c3_42 = arith.constant 3 : index
    %c0_43 = arith.constant 0 : index
    %c0_44 = arith.constant 0 : index
    %118 = vector.load %arg2[%c3_42, %c0_43, %c0_44] : memref<6x128x128xbf16, #tpu.memory_space<vmem>>, vector<1x128x128xbf16>
    %119 = vector.shape_cast %118 : vector<1x128x128xbf16> to vector<128x128xbf16>
    %cst_45 = arith.constant dense<0.000000e+00> : vector<8x128xf32>
    %120 = tpu.matmul %1, %119, %cst_45 {dimension_numbers = #tpu.dot_dimension_numbers<[1], [0], [0], [1], [0, 0, 1, 1], [], []>} : vector<8x128xbf16>, vector<128x128xbf16>, vector<8x128xf32> -> vector<8x128xf32>
    %121 = arith.addf %117, %120 : vector<8x128xf32>
    %122 = vector.broadcast %6 : vector<1x128xf32> to vector<8x128xf32>
    %123 = arith.addf %121, %122 : vector<8x128xf32>
    %cst_46 = arith.constant 0.000000e+00 : f32
    %124 = vector.broadcast %cst_46 : f32 to vector<8x128xf32>
    %125 = arith.cmpf ogt, %123, %124 : vector<8x128xf32>
    %cst_47 = arith.constant 0.000000e+00 : f32
    %126 = vector.broadcast %cst_47 : f32 to vector<8x128xf32>
    %127 = arith.minimumf %123, %126 : vector<8x128xf32>
    %128 = math.exp %127 : vector<8x128xf32>
    %cst_48 = arith.constant 1.000000e+00 : f32
    %129 = vector.broadcast %cst_48 : f32 to vector<8x128xf32>
    %130 = arith.subf %128, %129 : vector<8x128xf32>
    %131 = arith.select %125, %123, %130 : vector<8x128xi1>, vector<8x128xf32>
    %132 = arith.truncf %131 : vector<8x128xf32> to vector<8x128xbf16>
    %c4_49 = arith.constant 4 : index
    %c0_50 = arith.constant 0 : index
    %c0_51 = arith.constant 0 : index
    %133 = vector.load %arg2[%c4_49, %c0_50, %c0_51] : memref<6x128x128xbf16, #tpu.memory_space<vmem>>, vector<1x128x128xbf16>
    %134 = vector.shape_cast %133 : vector<1x128x128xbf16> to vector<128x128xbf16>
    %cst_52 = arith.constant dense<0.000000e+00> : vector<8x128xf32>
    %135 = tpu.matmul %132, %134, %cst_52 {dimension_numbers = #tpu.dot_dimension_numbers<[1], [0], [0], [1], [0, 0, 1, 1], [], []>} : vector<8x128xbf16>, vector<128x128xbf16>, vector<8x128xf32> -> vector<8x128xf32>
    %136 = vector.broadcast %7 : vector<1x128xf32> to vector<8x128xf32>
    %137 = arith.addf %135, %136 : vector<8x128xf32>
    %cst_53 = arith.constant 0.000000e+00 : f32
    %138 = vector.broadcast %cst_53 : f32 to vector<8x128xf32>
    %139 = arith.cmpf ogt, %137, %138 : vector<8x128xf32>
    %cst_54 = arith.constant 0.000000e+00 : f32
    %140 = vector.broadcast %cst_54 : f32 to vector<8x128xf32>
    %141 = arith.minimumf %137, %140 : vector<8x128xf32>
    %142 = math.exp %141 : vector<8x128xf32>
    %cst_55 = arith.constant 1.000000e+00 : f32
    %143 = vector.broadcast %cst_55 : f32 to vector<8x128xf32>
    %144 = arith.subf %142, %143 : vector<8x128xf32>
    %145 = arith.select %139, %137, %144 : vector<8x128xi1>, vector<8x128xf32>
    %146 = arith.truncf %145 : vector<8x128xf32> to vector<8x128xbf16>
    %c5_56 = arith.constant 5 : index
    %c0_57 = arith.constant 0 : index
    %c0_58 = arith.constant 0 : index
    %147 = vector.load %arg2[%c5_56, %c0_57, %c0_58] : memref<6x128x128xbf16, #tpu.memory_space<vmem>>, vector<1x128x128xbf16>
    %148 = vector.shape_cast %147 : vector<1x128x128xbf16> to vector<128x128xbf16>
    %cst_59 = arith.constant dense<0.000000e+00> : vector<8x128xf32>
    %149 = tpu.matmul %146, %148, %cst_59 {dimension_numbers = #tpu.dot_dimension_numbers<[1], [0], [0], [1], [0, 0, 1, 1], [], []>} : vector<8x128xbf16>, vector<128x128xbf16>, vector<8x128xf32> -> vector<8x128xf32>
    %150 = vector.extract_strided_slice %149 {offsets = [0, 0], sizes = [8, 8], strides = [1, 1]} : vector<8x128xf32> to vector<8x8xf32>
    %151 = vector.broadcast %8 : vector<1x8xf32> to vector<8x8xf32>
    %152 = arith.addf %150, %151 : vector<8x8xf32>
    %cst_60 = arith.constant dense<0.000000e+00> : vector<8xf32>
    %153 = vector.multi_reduction <add>, %152, %cst_60 [0] : vector<8x8xf32> to vector<8xf32>
    %154 = vector.shape_cast %153 : vector<8xf32> to vector<1x8xf32>
    %cst_61 = arith.constant 8.000000e+00 : f32
    %155 = vector.broadcast %cst_61 : f32 to vector<1x8xf32>
    %156 = arith.divf %154, %155 : vector<1x8xf32>
    %157 = vector.broadcast %156 : vector<1x8xf32> to vector<8x8xf32>
    %158 = arith.subf %152, %157 : vector<8x8xf32>
    %159 = arith.mulf %158, %158 : vector<8x8xf32>
    %cst_62 = arith.constant dense<0.000000e+00> : vector<8xf32>
    %160 = vector.multi_reduction <add>, %159, %cst_62 [0] : vector<8x8xf32> to vector<8xf32>
    %161 = vector.shape_cast %160 : vector<8xf32> to vector<1x8xf32>
    %cst_63 = arith.constant 8.000000e+00 : f32
    %162 = vector.broadcast %cst_63 : f32 to vector<1x8xf32>
    %163 = arith.divf %161, %162 : vector<1x8xf32>
    %164 = vector.broadcast %156 : vector<1x8xf32> to vector<8x8xf32>
    %165 = arith.subf %152, %164 : vector<8x8xf32>
    %cst_64 = arith.constant 9.99999974E-6 : f32
    %166 = vector.broadcast %cst_64 : f32 to vector<1x8xf32>
    %167 = arith.addf %163, %166 : vector<1x8xf32>
    %168 = math.rsqrt %167 : vector<1x8xf32>
    %169 = vector.broadcast %168 : vector<1x8xf32> to vector<8x8xf32>
    %170 = arith.mulf %165, %169 : vector<8x8xf32>
    %171 = vector.broadcast %9 : vector<1x8xf32> to vector<8x8xf32>
    %172 = arith.mulf %170, %171 : vector<8x8xf32>
    %173 = vector.broadcast %10 : vector<1x8xf32> to vector<8x8xf32>
    %174 = arith.addf %172, %173 : vector<8x8xf32>
    %cst_65 = arith.constant dense<0xFF800000> : vector<8xf32>
    %175 = vector.multi_reduction <maximumf>, %174, %cst_65 [1] : vector<8x8xf32> to vector<8xf32>
    %176 = vector.shape_cast %175 : vector<8xf32> to vector<8x1xf32>
    %177 = vector.broadcast %176 : vector<8x1xf32> to vector<8x8xf32>
    %178 = arith.subf %174, %177 : vector<8x8xf32>
    %179 = math.exp %178 : vector<8x8xf32>
    %cst_66 = arith.constant dense<0.000000e+00> : vector<8xf32>
    %180 = vector.multi_reduction <add>, %179, %cst_66 [1] : vector<8x8xf32> to vector<8xf32>
    %181 = vector.shape_cast %180 : vector<8xf32> to vector<8x1xf32>
    %182 = vector.broadcast %181 : vector<8x1xf32> to vector<8x8xf32>
    %183 = arith.divf %179, %182 : vector<8x8xf32>
    %184 = tpu.iota {dimensions = array<i32: 0>} : vector<128x8xi32>
    %c23_i32 = arith.constant 23 : i32
    %185 = vector.broadcast %c23_i32 : i32 to vector<128x8xi32>
    %186 = arith.cmpi eq, %184, %185 : vector<128x8xi32>
    %187 = arith.extui %186 : vector<128x8xi1> to vector<128x8xi32>
    %188 = arith.sitofp %187 : vector<128x8xi32> to vector<128x8xf32>
    %cst_67 = arith.constant 0.000000e+00 : f32
    %189 = vector.broadcast %cst_67 : f32 to vector<128x8xf32>
    %190 = arith.subf %189, %188 : vector<128x8xf32>
    %cst_68 = arith.constant dense<0.000000e+00> : vector<8x8xf32>
    %191 = tpu.matmul %0, %190, %cst_68 {dimension_numbers = #tpu.dot_dimension_numbers<[1], [0], [0], [1], [0, 0, 1, 1], [], []>} : vector<8x128xf32>, vector<128x8xf32>, vector<8x8xf32> -> vector<8x8xf32>
    %192 = tpu.iota {dimensions = array<i32: 0>} : vector<8x8xi32>
    %193 = tpu.iota {dimensions = array<i32: 1>} : vector<8x8xi32>
    %194 = arith.cmpi sle, %192, %193 : vector<8x8xi32>
    %195 = arith.extui %194 : vector<8x8xi1> to vector<8x8xi32>
    %196 = arith.sitofp %195 : vector<8x8xi32> to vector<8x8xf32>
    %cst_69 = arith.constant dense<0.000000e+00> : vector<8x8xf32>
    %197 = tpu.matmul %183, %196, %cst_69 {dimension_numbers = #tpu.dot_dimension_numbers<[1], [0], [0], [1], [0, 0, 1, 1], [], []>} : vector<8x8xf32>, vector<8x8xf32>, vector<8x8xf32> -> vector<8x8xf32>
    %198 = arith.addf %197, %191 : vector<8x8xf32>
    %cst_70 = arith.constant 0.000000e+00 : f32
    %199 = vector.broadcast %cst_70 : f32 to vector<8x8xf32>
    %200 = arith.cmpf olt, %198, %199 : vector<8x8xf32>
    %201 = arith.extui %200 : vector<8x8xi1> to vector<8x8xi32>
    %cst_71 = arith.constant dense<0> : vector<8xi32>
    %202 = vector.multi_reduction <add>, %201, %cst_71 [1] : vector<8x8xi32> to vector<8xi32>
    %203 = vector.shape_cast %202 : vector<8xi32> to vector<8x1xi32>
    %c7_i32 = arith.constant 7 : i32
    %204 = vector.broadcast %c7_i32 : i32 to vector<8x1xi32>
    %205 = arith.minsi %203, %204 : vector<8x1xi32>
    %206 = arith.sitofp %84 : vector<8x1xi32> to vector<8x1xf32>
    %207 = arith.sitofp %205 : vector<8x1xi32> to vector<8x1xf32>
    %cst_72 = arith.constant 0.000000e+00 : f32
    %208 = vector.broadcast %cst_72 : f32 to vector<8x114xf32>
    %209 = tpu.concatenate %62, %183, %206, %207, %208 in 1 : vector<8x4xf32>, vector<8x8xf32>, vector<8x1xf32>, vector<8x1xf32>, vector<8x114xf32> -> vector<8x128xf32>
    %c0_73 = arith.constant 0 : index
    %c0_74 = arith.constant 0 : index
    %210 = vector.load %arg3[%c0_73, %c0_74] : memref<8x128xf32, #tpu.memory_space<vmem>>, vector<8x128xf32>
    tpu.vector_store %arg3[%c0_73, %c0_74], %209 {strides = array<i32>} : memref<8x128xf32, #tpu.memory_space<vmem>>, vector<8x128xf32>,
    return
  }
}

</mosaic_0001>

<bundles_post_ra>
// kernel: tpu_custom_call.1
= control target key start
LH: loop header
LB: loop body
LE: loop exit
PB: predicated region body
PF: predicated region fallthrough
CT: control target
= control target key end

     0   :  { %8 = vsyncpa [#allocation3], 0  ;;  %s2496_s0 = inlined_call_operand.hbm [shape: f32[8,128], index: 0, kind: input, shape index: {}]   ;;  %s2497_s1 = inlined_call_operand.hbm [shape: f32[16,128], index: 1, kind: input, shape index: {}]   ;;  %s2498_s2 = inlined_call_operand.hbm [shape: bf16[6,128,128], index: 2, kind: input, shape index: {}]   ;;  %s2499_s3 = inlined_call_operand.hbm [shape: f32[8,128], index: 3, kind: output, shape index: {}]  }
   0x1   :  { %9 = vsyncpa [#allocation6], 0 }
   0x2   :  { %10 = vsyncpa [#allocation4], 0  ;;  %s2222_s12 = smov [#allocation5]   ;;  %s2128_s16 = scalar_lea.hbm %s2497_s1, 256 }
   0x3   :  { %s26_s13 = sshll.u32 %s2222_s12, 4  ;;  %p2129_p0 = scmp.ne.s32.totalorder %s2497_s1, %s2128_s16  ;;  %s27_s13 = int_to_ptr.vmem [resolvable:$true] %s26_s13 }
   0x4   :  { %p2132_p1 = scmp.lt.u32.totalorder %s2128_s16, %s2497_s1 }
   0x6   :  { %p2134_p2 = pnand %p2132_p1, %p2129_p0 }
   0x8   :  { %2137 = shalt.err (!%p2134_p2)
}
   0x9   :  { %s2138_s21 = scalar_lea.vmem %s27_s13, 256  ;;  %p2143_p4 = scmp.lt.s32.totalorder %s27_s13, %s27_s13 }
   0xa   :  { %p2139_p3 = scmp.ne.s32.totalorder %s27_s13, %s2138_s21  ;;  %p2144_p5 = scmp.lt.s32.totalorder %s2138_s21, %s2138_s21 }
   0xc   :  { %p2145_p6 = por %p2144_p5, %p2143_p4 }
   0xe   :  { %p2146_p7 = pnand %p2145_p6, %p2139_p3 }
  0x10   :  { %2149 = shalt.err (!%p2146_p7)
}
  0x11   :  { %s2223_s22 = smov 128   ;;  %s2224_s23 = smov 8  }
  0x12   :  { %32 = dma.hbm_to_vmem [thread:$0]  %s2497_s1, 256, %s27_s13, [#allocation6], %s2223_s22, %s2223_s22, %s2224_s23  }
  0x13   :  { %s2225_s26 = smov [#allocation2]   ;;  %s2226_s28 = smov [#allocation7]  }
  0x14   :  { %s17_s27 = sshll.u32 %s2225_s26, 4  ;;  %s38_s29 = sshll.u32 %s2226_s28, 4  ;;  %s18_s27 = int_to_ptr.vmem [resolvable:$true] %s17_s27  ;;  %s39_s29 = int_to_ptr.vmem [resolvable:$true] %s38_s29 }
  0x15   :  { %s2150_s5 = scalar_lea.hbm %s2496_s0, 128 }
  0x16   :  { %p2151_p8 = scmp.ne.s32.totalorder %s2496_s0, %s2150_s5  ;;  %p2154_p9 = scmp.lt.u32.totalorder %s2150_s5, %s2496_s0 }
  0x18   :  { %p2156_p10 = pnand %p2154_p9, %p2151_p8 }
  0x1a   :  { %2159 = shalt.err (!%p2156_p10)
}
  0x1b   :  { %s2160_s1 = scalar_lea.vmem %s18_s27, 128  ;;  %p2165_p12 = scmp.lt.s32.totalorder %s18_s27, %s18_s27 }
  0x1c   :  { %p2161_p11 = scmp.ne.s32.totalorder %s18_s27, %s2160_s1  ;;  %p2166_p13 = scmp.lt.s32.totalorder %s2160_s1, %s2160_s1 }
  0x1e   :  { %p2167_p0 = por %p2166_p13, %p2165_p12 }
  0x20   :  { %p2168_p1 = pnand %p2167_p0, %p2161_p11 }
  0x22   :  { %2171 = shalt.err (!%p2168_p1)
}
  0x23   :  { %20 = dma.hbm_to_vmem [thread:$0]  %s2496_s0, 128, %s18_s27, [#allocation3]  }
  0x24   :  { %s2172_s14 = scalar_lea.hbm %s2498_s2, 6144 }
  0x25   :  { %p2173_p2 = scmp.ne.s32.totalorder %s2498_s2, %s2172_s14  ;;  %p2176_p3 = scmp.lt.u32.totalorder %s2172_s14, %s2498_s2 }
  0x27   :  { %p2178_p4 = pnand %p2176_p3, %p2173_p2 }
  0x29   :  { %2181 = shalt.err (!%p2178_p4)
}
  0x2a   :  { %s2182_s19 = scalar_lea.vmem %s39_s29, 6144  ;;  %p2187_p6 = scmp.lt.s32.totalorder %s39_s29, %s39_s29 }
  0x2b   :  { %p2183_p5 = scmp.ne.s32.totalorder %s39_s29, %s2182_s19  ;;  %p2188_p7 = scmp.lt.s32.totalorder %s2182_s19, %s2182_s19 }
  0x2d   :  { %p2189_p8 = por %p2188_p7, %p2187_p6 }
  0x2f   :  { %p2190_p9 = pnand %p2189_p8, %p2183_p5 }
  0x31   :  { %2193 = shalt.err (!%p2190_p9)
}
  0x32   :  { %s2227_s0 = smov 64   ;;  %s2228_s20 = smov 4  }
  0x33   :  { %44 = dma.hbm_to_vmem [thread:$0]  %s2498_s2, 6144, %s39_s29, [#allocation6], %s2227_s0, %s2227_s0, %s2228_s20  }
  0x34   :  { %2216 = dma.done.wait [#allocation3], 128  }
  0x35   :  { %2217 = vsyncadd [#allocation3], 4294967168 }
  0x36   :  { %2218 = dma.done.wait [#allocation6], 6400  }
  0x37   :  { %2219 = vsyncadd [#allocation6], 4294960896  ;;  %v2229_v0 = vmov 0.0   ;;  %vm2230_vm0 = vmmov 0   ;;  %v2062_v1 = vld [vmem:[#allocation7] sm:$0xff]   ;;  %v2063_v2 = vld [vmem:[#allocation7 + $0x8] sm:$0xff]  }
  0x38   :  { %1833 = vmatprep.subr.bf16.mxu0 %v2229_v0  ;;  %1849 = vmatprep.mubr.msk.bf16.mxu0 %vm2230_vm0, %v2229_v0  ;;  %v2064_v3 = vld [vmem:[#allocation7 + $0x10] sm:$0xff]   ;;  %v2070_v4 = vld [vmem:[#allocation7 + $0x40] sm:$0xff]   ;;  %v2065_v5 = vld [vmem:[#allocation7 + $0x18] sm:$0xff]   ;;  %vm292_vm2 = vcmask 31744   ;;  %v2231_v63 = vmov 0.0|0.0   ;;  %vm495_vm5 = vcmask 1043456  }
  0x39   :  { %1853 = vmatprep.subr.bf16.mxu1 %v2229_v0  ;;  %1869 = vmatprep.mubr.msk.bf16.mxu1 %vm2230_vm0, %v2229_v0  ;;  %v2071_v6 = vld [vmem:[#allocation7 + $0x48] sm:$0xff]   ;;  %v2066_v7 = vld [vmem:[#allocation7 + $0x20] sm:$0xff]   ;;  %v2068_v9 = vld [vmem:[#allocation7 + $0x30] sm:$0xff]   ;;  %s2235_s2 = smov [#allocation8]  }
  0x3a   :  { %1834 = vmatpush3.bf16.msra.mxu0 %v2062_v1  ;;  %1854 = vmatpush3.bf16.msra.mxu1 %v2070_v4  ;;  %v2067_v8 = vld [vmem:[#allocation7 + $0x28] sm:$0xff]   ;;  %v2069_v10 = vld [vmem:[#allocation7 + $0x38] sm:$0xff]   ;;  %v2072_v13 = vld [vmem:[#allocation7 + $0x50] sm:$0xff]   ;;  %s1639_s23 = sshll.u32 %s2235_s2, 4  ;;  %s1640_s23 = int_to_ptr.vmem [resolvable:$true] %s1639_s23 }
  0x3b   :  { %1835 = vmatprep.subr.bf16.mxu0 %v2229_v0  ;;  %1855 = vmatprep.subr.bf16.mxu1 %v2229_v0  ;;  %v2307_v11 = vld [vmem:[#allocation2] sm:$0xff]  ;;  %v2073_v14 = vld [vmem:[#allocation7 + $0x58] sm:$0xff]   ;;  %v2074_v15 = vld [vmem:[#allocation7 + $0x60] sm:$0xff]   ;;  %s2194_s24 = scalar_lea.vmem %s1640_s23, 128  ;;  %p2199_p11 = scmp.lt.s32.totalorder %s1640_s23, %s1640_s23 }
  0x3c   :  { %v2312_v12 = vpack.c.bf16 %v2307_v11, %v2307_v11  ;;  %v2075_v16 = vld [vmem:[#allocation7 + $0x68] sm:$0xff]   ;;  %v2076_v17 = vld [vmem:[#allocation7 + $0x70] sm:$0xff]   ;;  %v2077_v18 = vld [vmem:[#allocation7 + $0x78] sm:$0xff]   ;;  %p2195_p10 = scmp.ne.s32.totalorder %s1640_s23, %s2194_s24  ;;  %p2200_p12 = scmp.lt.s32.totalorder %s2194_s24, %s2194_s24 }
  0x3d   :  { %v1649_v19 = vld [vmem:[#allocation5] ss:$0 sm:$0xff]  ;;  %v1667_v31 = vld [vmem:[#allocation5 + $0x1] ss:$0 sm:$0xff]  ;;  %v1668_v57 = vld [vmem:[#allocation5 + $0x2] ss:$0 sm:$0xff] }
  0x3e   :  { %1836 = vmatpush3.bf16.msra.mxu0 %v2063_v2  ;;  %1856 = vmatpush3.bf16.msra.mxu1 %v2071_v6  ;;  %v1669_v59 = vld [vmem:[#allocation5 + $0x3] ss:$0 sm:$0xff]  ;;  %v336_v6 = vlaneseq  ;;  %p2201_p13 = por %p2200_p12, %p2199_p11 }
  0x3f   :  { %1837 = vmatprep.subr.bf16.mxu0 %v2229_v0  ;;  %1857 = vmatprep.subr.bf16.mxu1 %v2229_v0 }
  0x40   :  { %p2202_p0 = pnand %p2201_p13, %p2195_p10 }
  0x42   :  { %1838 = vmatpush3.bf16.msra.mxu0 %v2064_v3  ;;  %1858 = vmatpush3.bf16.msra.mxu1 %v2072_v13  ;;  %v2343_v13 = vand.u32 127, %v336_v6 }
  0x43   :  { %1839 = vmatprep.subr.bf16.mxu0 %v2229_v0  ;;  %1859 = vmatprep.subr.bf16.mxu1 %v2229_v0 }
  0x46   :  { %1840 = vmatpush3.bf16.msra.mxu0 %v2065_v5  ;;  %1860 = vmatpush3.bf16.msra.mxu1 %v2073_v14 }
  0x47   :  { %1841 = vmatprep.subr.bf16.mxu0 %v2229_v0  ;;  %1861 = vmatprep.subr.bf16.mxu1 %v2229_v0 }
  0x4a   :  { %1842 = vmatpush3.bf16.msra.mxu0 %v2066_v7  ;;  %1862 = vmatpush3.bf16.msra.mxu1 %v2074_v15  ;;  %v2332_v7 = vshrl.u32 %v336_v6, 7 }
  0x4b   :  { %1843 = vmatprep.subr.bf16.mxu0 %v2229_v0  ;;  %1863 = vmatprep.subr.bf16.mxu1 %v2229_v0 }
  0x4c   :  { %vm489_vm4 = vcmp.le.s32.totalorder %v2332_v7, %v2343_v13 }
  0x4d   :  { %v1671_v14 = vsel %vm489_vm4, 1.0, %v2229_v0 }
  0x4e   :  { %1844 = vmatpush3.bf16.msra.mxu0 %v2067_v8  ;;  %1864 = vmatpush3.bf16.msra.mxu1 %v2075_v16  ;;  %v2335_v8 = vadd.s32 16, %v2332_v7 }
  0x4f   :  { %1845 = vmatprep.subr.bf16.mxu0 %v2229_v0  ;;  %1865 = vmatprep.subr.bf16.mxu1 %v2229_v0 }
  0x50   :  { %vm355_vm3 = vcmp.eq.s32.totalorder %v2335_v8, 22 }
  0x52   :  { %1846 = vmatpush3.bf16.msra.mxu0 %v2068_v9  ;;  %1866 = vmatpush3.bf16.msra.mxu1 %v2076_v17  ;;  %v1670_v9 = vsel %vm355_vm3, 1.0, %v2229_v0 }
  0x53   :  { %1847 = vmatprep.subr.bf16.mxu0 %v2229_v0  ;;  %1867 = vmatprep.subr.bf16.mxu1 %v2229_v0 }
  0x56   :  { %1848 = vmatpush3.bf16.msra.mxu0 %v2069_v10  ;;  %1868 = vmatpush3.bf16.msra.mxu1 %v2077_v18  ;;  %v403_v10 = vsub.f32 0.0, %v1670_v9  ;;  %v338_v18 = vadd.s32 8, %v2332_v7 }
  0x57   :  { %2016 = vmatprep.subr.bf16.mxu0 %v2231_v63  ;;  %2018 = vmatprep.subr.bf16.mxu1 %v2231_v63 }
  0x59   :  { %1850 = vmatmul.mubr.bf16.vlgmr.msra.gmra.mrb[0].mxu0 %v2312_v12 }
  0x5a   :  { %1879 = vmatprep.mubr.msk.f32.mxu0 %vm2230_vm0, %v2229_v0  ;;  %2017 = vmatpush3.bf16.msra.mxu0 %v2231_v63 }
  0x5b   :  { %1877 = vmatprep.subr.mxu0 %v2229_v0 }
  0x5e   :  { %1878 = vmatpush3.msra.mxu0 %v403_v10 }
  0x5f   :  { %1882 = vmatprep.subr.mxu0 %v2229_v0 }
  0x61   :  { %1880 = vmatmul.mubr.f32.vlgmr.msra.gmra.mrb[4].mxu0 %v2307_v11 }
  0x62   :  { %1884 = vmatprep.mubr.msk.f32.mxu0 %vm2230_vm0, %v2229_v0  ;;  %1883 = vmatpush3.msk.msra.mxu0 %vm495_vm5, %v1671_v14 }
  0x63   :  { %1922 = vmatprep.subr.bf16.mxu0 %v2229_v0 }
 0x12c   :  { %v169_v20 = vpop.f32.mrb[0].mxu0 }
 0x12d   :  { %v170_v21 = vadd.f32 %v1649_v19, %v169_v20  ;;  %v1851_v22 = vpop.f32.mrb[1].mxu0  ;;  %v598_v19 = vand.u32 3, %v2332_v7  ;;  %v340_v20 = vadd.s32 24, %v2332_v7 }
 0x12e   :  { %v172_v23 = vpop.f32.mrb[2].mxu0  ;;  %v341_v22 = vadd.s32 32, %v2332_v7 }
 0x12f   :  { %v176_v24 = vmin.f32 %v170_v21, 0.0  ;;  %v1852_v25 = vpop.f32.mrb[3].mxu0  ;;  %vm175_vm1 = vcmp.gt.f32.partialorder %v170_v21, 0.0  ;;  %v342_v23 = vadd.s32 40, %v2332_v7  ;;  %vm786_vm6 = vcmp.eq.s32.totalorder %v598_v19, %v2343_v13 }
 0x130   :  { %v619_v25 = vand.u32 3, %v340_v20  ;;  %v2079_v20 = vld [vmem:[#allocation7 + $0x80] sm:$0xff]  }
 0x131   :  { %v177_v26 = vmul.f32 1.442695, %v176_v24  ;;  %v605_v24 = vand.u32 3, %v338_v18 }
 0x132   :  { %vm789_vm9 = vcmp.eq.s32.totalorder %v619_v25, %v2343_v13  ;;  %v2087_v25 = vld [vmem:[#allocation7 + $0xa0] sm:$0xff]  }
 0x133   :  { %2110 = vpow2.f32 %v177_v26  ;;  %vm787_vm8 = vcmp.eq.s32.totalorder %v605_v24, %v2343_v13  ;;  %v2085_v24 = vld [vmem:[#allocation7 + $0x98] sm:$0xff]   ;;  %v2089_v26 = vld [vmem:[#allocation7 + $0xa8] sm:$0xff]  }
 0x134   :  { %vm2019_vm10 = vmpackc.low %vm787_vm8, %vm786_vm6 }
 0x13d   :  { %v2111_v27 = vpop.eup %2110 }
 0x13e   :  { %v1658_v28 = vadd.f32 -1.0, %v2111_v27  ;;  %v343_v27 = vadd.s32 48, %v2332_v7 }
 0x140   :  { %v180_v29 = vsel %vm175_vm1, %v170_v21, %v1658_v28  ;;  %v612_v21 = vand.u32 3, %v2335_v8  ;;  %v344_v28 = vadd.s32 56, %v2332_v7 }
 0x141   :  { %v181_v30 = vpack.c.bf16 %v180_v29, %v180_v29  ;;  %v626_v29 = vand.u32 3, %v341_v22  ;;  %v2081_v22 = vld [vmem:[#allocation7 + $0x88] sm:$0xff]  }
 0x142   :  { %vm2366_vm7 = vcmp.eq.s32.totalorder %v612_v21, %v2343_v13 }
 0x143   :  { %1870 = vmatmul.mubr.bf16.vlgmr.msra.gmra.mrb[0].mxu1 %v181_v30  ;;  %v633_v30 = vand.u32 3, %v342_v23  ;;  %vm2022_vm11 = vmpackc.low %vm789_vm9, %vm2366_vm7  ;;  %vm790_vm12 = vcmp.eq.s32.totalorder %v626_v29, %v2343_v13  ;;  %v2083_v23 = vld [vmem:[#allocation7 + $0x90] sm:$0xff]   ;;  %v2094_v29 = vld [vmem:[#allocation7 + $0x100] sm:$0xff]  }
 0x144   :  { %1919 = vmatprep.mubr.msk.f32.mxu1 %vm2230_vm0, %v2229_v0 }
 0x145   :  { %vm791_vm13 = vcmp.eq.s32.totalorder %v633_v30, %v2343_v13  ;;  %v2095_v30 = vld [vmem:[#allocation7 + $0x108] sm:$0xff]  }
 0x146   :  { %vm2025_vm14 = vmpackc.low %vm791_vm13, %vm790_vm12 }
 0x216   :  { %v281_v32 = vpop.f32.mrb[0].mxu1 }
 0x217   :  { %v291_v33 = vadd.f32 %v1667_v31, %v281_v32  ;;  %v1871_v34 = vpop.f32.mrb[1].mxu1  ;;  %v2232_v31 = vmov 1.0|1.0   ;;  %v640_v32 = vand.u32 3, %v343_v27  ;;  %v2091_v27 = vld [vmem:[#allocation7 + $0xb0] sm:$0xff]  }
 0x218   :  { %v284_v35 = vpop.f32.mrb[2].mxu1  ;;  %2020 = vmatpush3.bf16.msk.msra.mxu1 %vm2019_vm10, %v2232_v31 }
 0x219   :  { %v293_v36 = vsel %vm292_vm2, %v291_v33, 0.0  ;;  %v1872_v37 = vpop.f32.mrb[3].mxu1  ;;  %2021 = vmatprep.subr.bf16.mxu1 %v2231_v63  ;;  %vm792_vm15 = vcmp.eq.s32.totalorder %v640_v32, %v2343_v13 }
 0x21a   :  { %v294_v38 = vrot.slane %v293_v36, 4 }
 0x21c   :  { %v295_v39 = vadd.f32 %v294_v38, %v293_v36  ;;  %2023 = vmatpush3.bf16.msk.msra.mxu1 %vm2022_vm11, %v2232_v31  ;;  %v2233_v36 = vmov 0  }
 0x21d   :  { %2024 = vmatprep.subr.bf16.mxu1 %v2231_v63 }
 0x21e   :  { %v296_v40 = vrot.slane %v295_v39, 2 }
 0x220   :  { %v297_v41 = vadd.f32 %v296_v40, %v295_v39  ;;  %2026 = vmatpush3.bf16.msk.msra.mxu1 %vm2025_vm14, %v2232_v31 }
 0x221   :  { %2027 = vmatprep.subr.bf16.mxu1 %v2231_v63 }
 0x222   :  { %v298_v42 = vrot.slane %v297_v41, 1 }
 0x224   :  { %v299_v43 = vadd.f32 %v298_v42, %v297_v41 }
 0x226   :  { %v301_v44 = vmul.f32 0.125, %v299_v43  ;;  %v345_v43 = vadd.s32 64, %v2332_v7 }
 0x228   :  { %v302_v45 = vsub.f32 %v291_v33, %v301_v44  ;;  %v647_v33 = vand.u32 3, %v344_v28  ;;  %v346_v44 = vadd.s32 72, %v2332_v7  ;;  %v2093_v28 = vld [vmem:[#allocation7 + $0xb8] sm:$0xff]  }
 0x22a   :  { %v303_v46 = vmul.f32 %v302_v45, %v302_v45  ;;  %vm793_vm1 = vcmp.eq.s32.totalorder %v647_v33, %v2343_v13 }
 0x22b   :  { %vm2028_vm3 = vmpackc.low %vm793_vm1, %vm792_vm15 }
 0x22c   :  { %v304_v47 = vsel %vm292_vm2, %v303_v46, 0.0  ;;  %2029 = vmatpush3.bf16.msk.msra.mxu1 %vm2028_vm3, %v2232_v31  ;;  %v661_v46 = vand.u32 3, %v346_v44  ;;  %v2101_v44 = vld [vmem:[#allocation7 + $0x138] sm:$0xff]  }
 0x22d   :  { %v305_v48 = vrot.slane %v304_v47, 4  ;;  %2030 = vmatprep.subr.bf16.mxu1 %v2231_v63 }
 0x22e   :  { %vm795_vm7 = vcmp.eq.s32.totalorder %v661_v46, %v2343_v13  ;;  %v2103_v46 = vld [vmem:[#allocation7 + $0x148] sm:$0xff]  }
 0x22f   :  { %v306_v49 = vadd.f32 %v305_v48, %v304_v47  ;;  %v347_v47 = vadd.s32 80, %v2332_v7  ;;  %v348_v48 = vadd.s32 88, %v2332_v7 }
 0x231   :  { %v307_v50 = vrot.slane %v306_v49, 2 }
 0x233   :  { %v308_v51 = vadd.f32 %v307_v50, %v306_v49  ;;  %v668_v49 = vand.u32 3, %v347_v47  ;;  %v675_v50 = vand.u32 3, %v348_v48  ;;  %v1724_v47 = vld [vmem:[#allocation5 + $0x4] ss:$0 sm:$0xff] }
 0x235   :  { %v309_v52 = vrot.slane %v308_v51, 1  ;;  %vm796_vm9 = vcmp.eq.s32.totalorder %v668_v49, %v2343_v13  ;;  %vm797_vm10 = vcmp.eq.s32.totalorder %v675_v50, %v2343_v13 }
 0x236   :  { %vm2034_vm11 = vmpackc.low %vm797_vm10, %vm796_vm9  ;;  %vm1354_vm9 = vcmask 64512   ;;  %vm1399_vm10 = vcmp.eq.s32.totalorder %v2335_v8, 23 }
 0x237   :  { %v310_v53 = vadd.f32 %v309_v52, %v308_v51  ;;  %v349_v51 = vadd.s32 96, %v2332_v7  ;;  %v350_v52 = vadd.s32 104, %v2332_v7 }
 0x239   :  { %v311_v54 = vmul.f32 0.125, %v310_v53  ;;  %v682_v53 = vand.u32 3, %v349_v51 }
 0x23b   :  { %v312_v55 = vadd.f32 1e-05, %v311_v54  ;;  %v689_v54 = vand.u32 3, %v350_v52  ;;  %vm798_vm12 = vcmp.eq.s32.totalorder %v682_v53, %v2343_v13 }
 0x23d   :  { %2112 = vrsqrt.f32 %v312_v55  ;;  %vm799_vm13 = vcmp.eq.s32.totalorder %v689_v54, %v2343_v13  ;;  %v351_v55 = vadd.s32 112, %v2332_v7 }
 0x23e   :  { %vm2037_vm14 = vmpackc.low %vm799_vm13, %vm798_vm12  ;;  %vm1628_vm12 = vcmask 105472   ;;  %vm1630_vm13 = vcmask 113664  }
 0x247   :  { %v2113_v56 = vpop.eup %2112 }
 0x248   :  { %v314_v58 = vmul.f32 %v2113_v56, %v302_v45  ;;  %v654_v45 = vand.u32 3, %v345_v43  ;;  %v352_v56 = vadd.s32 120, %v2332_v7  ;;  %v2100_v43 = vld [vmem:[#allocation7 + $0x130] sm:$0xff]  }
 0x24a   :  { %v319_v60 = vmul.f32 %v1668_v57, %v314_v58  ;;  %vm794_vm6 = vcmp.eq.s32.totalorder %v654_v45, %v2343_v13  ;;  %v696_v57 = vand.u32 3, %v351_v55  ;;  %v703_v58 = vand.u32 3, %v352_v56  ;;  %v2102_v45 = vld [vmem:[#allocation7 + $0x140] sm:$0xff]  }
 0x24b   :  { %vm2031_vm8 = vmpackc.low %vm795_vm7, %vm794_vm6 }
 0x24c   :  { %v324_v61 = vadd.f32 %v1669_v59, %v319_v60  ;;  %2032 = vmatpush3.bf16.msk.msra.mxu1 %vm2031_vm8, %v2232_v31  ;;  %vm800_vm15 = vcmp.eq.s32.totalorder %v696_v57, %v2343_v13  ;;  %vm801_vm1 = vcmp.eq.s32.totalorder %v703_v58, %v2343_v13  ;;  %v2078_v59 = vld [vmem:[#allocation7 + $0xc0] sm:$0xff]   ;;  %v2080_v60 = vld [vmem:[#allocation7 + $0xc8] sm:$0xff]  }
 0x24d   :  { %2033 = vmatprep.subr.bf16.mxu1 %v2231_v63  ;;  %vm2040_vm3 = vmpackc.low %vm801_vm1, %vm800_vm15 }
 0x24e   :  { %v325_v62 = vsel %vm292_vm2, %v324_v61, -inf }
 0x24f   :  { %326 = vmax.xlane.f32.xlu0 %v325_v62  ;;  %v2084_v62 = vld [vmem:[#allocation7 + $0xd8] sm:$0xff]  }
 0x250   :  { %2035 = vmatpush3.bf16.msk.msra.mxu1 %vm2034_vm11, %v2232_v31 }
 0x251   :  { %2036 = vmatprep.subr.bf16.mxu1 %v2231_v63 }
 0x254   :  { %2038 = vmatpush3.bf16.msk.msra.mxu1 %vm2037_vm14, %v2232_v31 }
 0x255   :  { %2039 = vmatprep.subr.bf16.mxu1 %v2231_v63 }
 0x258   :  { %2041 = vmatpush3.bf16.msk.msra.mxu1 %vm2040_vm3, %v2232_v31 }
 0x259   :  { %1942 = vmatprep.subr.bf16.mxu1 %v2229_v0 }
 0x2dc   :  { %v327_v1 = vpop.xlane.xlu0 %326 }
 0x2dd   :  { %v328_v2 = vsub.f32 %v324_v61, %v327_v1  ;;  %v2082_v61 = vld [vmem:[#allocation7 + $0xd0] sm:$0xff]   ;;  %v2086_v1 = vld [vmem:[#allocation7 + $0xe0] sm:$0xff]  }
 0x2df   :  { %v329_v3 = vmul.f32 1.442695, %v328_v2  ;;  %v2088_v2 = vld [vmem:[#allocation7 + $0xe8] sm:$0xff]  }
 0x2e1   :  { %2114 = vpow2.f32 %v329_v3  ;;  %v2090_v3 = vld [vmem:[#allocation7 + $0xf0] sm:$0xff]  }
 0x2eb   :  { %v2115_v4 = vpop.eup %2114 }
 0x2ec   :  { %v331_v5 = vsel %vm292_vm2, %v2115_v4, 0.0 }
 0x2ed   :  { %332 = vadd.xlane.f32.xlu0 %v331_v5 }
 0x37a   :  { %v333_v15 = vpop.xlane.xlu0 %332 }
 0x37b   :  { %2116 = vrcp.f32 %v333_v15 }
 0x385   :  { %v2117_v16 = vpop.eup %2116 }
 0x386   :  { %v2352_v17 = vmul.f32 %v2117_v16, %v2115_v4  ;;  %v2092_v4 = vld [vmem:[#allocation7 + $0xf8] sm:$0xff]  }
 0x387   :  { %v1674_v16 = vld [vmem:[#allocation5 + $0x9] ss:$0 sm:$0xff] }
 0x388   :  { %1885 = vmatmul.mubr.msk.f32.vlgmr.msra.gmra.mrb[4].mxu0 %vm292_vm2, %v2352_v17 }
 0x389   :  { %1938 = vmatprep.mubr.msk.bf16.mxu0 %vm2230_vm0, %v2229_v0  ;;  %1923 = vmatpush3.bf16.msra.mxu0 %v2078_v59 }
 0x38a   :  { %1924 = vmatprep.subr.bf16.mxu0 %v2229_v0 }
 0x38d   :  { %1925 = vmatpush3.bf16.msra.mxu0 %v2080_v60  ;;  %v2104_v60 = vld [vmem:[#allocation7 + $0x150] sm:$0xff]  }
 0x38e   :  { %1926 = vmatprep.subr.bf16.mxu0 %v2229_v0 }
 0x391   :  { %1927 = vmatpush3.bf16.msra.mxu0 %v2082_v61  ;;  %v2105_v61 = vld [vmem:[#allocation7 + $0x158] sm:$0xff]  }
 0x392   :  { %1928 = vmatprep.subr.bf16.mxu0 %v2229_v0 }
 0x395   :  { %1929 = vmatpush3.bf16.msra.mxu0 %v2084_v62  ;;  %v2106_v62 = vld [vmem:[#allocation7 + $0x160] sm:$0xff]  }
 0x396   :  { %1930 = vmatprep.subr.bf16.mxu0 %v2229_v0 }
 0x399   :  { %1931 = vmatpush3.bf16.msra.mxu0 %v2086_v1  ;;  %v2107_v1 = vld [vmem:[#allocation7 + $0x168] sm:$0xff]  }
 0x39a   :  { %1932 = vmatprep.subr.bf16.mxu0 %v2229_v0 }
 0x39d   :  { %1933 = vmatpush3.bf16.msra.mxu0 %v2088_v2  ;;  %v2109_v2 = vld [vmem:[#allocation7 + $0x178] sm:$0xff]  }
 0x39e   :  { %1934 = vmatprep.subr.bf16.mxu0 %v2229_v0 }
 0x3a1   :  { %1935 = vmatpush3.bf16.msra.mxu0 %v2090_v3  ;;  %v1726_v3 = vld [vmem:[#allocation5 + $0x5] ss:$0 sm:$0xff] }
 0x3a2   :  { %1936 = vmatprep.subr.bf16.mxu0 %v2229_v0 }
 0x3a5   :  { %1937 = vmatpush3.bf16.msra.mxu0 %v2092_v4 }
 0x3a6   :  { %1962 = vmatprep.subr.bf16.mxu0 %v2229_v0 }
 0x3a8   :  { %1939 = vmatmul.mubr.bf16.vlgmr.msra.gmra.mrb[8].mxu0 %v2312_v12 }
 0x3a9   :  { %1978 = vmatprep.mubr.msk.bf16.mxu0 %vm2230_vm0, %v2229_v0  ;;  %1963 = vmatpush3.bf16.msra.mxu0 %v2094_v29 }
 0x3aa   :  { %1964 = vmatprep.subr.bf16.mxu0 %v2229_v0 }
 0x3ad   :  { %1965 = vmatpush3.bf16.msra.mxu0 %v2095_v30 }
 0x3ae   :  { %1966 = vmatprep.subr.bf16.mxu0 %v2229_v0 }
 0x45b   :  { %v565_v34 = vpop.f32.mrb[4].mxu0 }
 0x45c   :  { %vm569_vm5 = vcmp.lt.f32.partialorder %v565_v34, 0.0  ;;  %v1886_v35 = vpop.f32.mrb[5].mxu0 }
 0x45d   :  { %v570_v37 = vsel %vm569_vm5, 1, %v2233_v36 }
 0x45e   :  { %v571_v38 = vsel %vm292_vm2, %v570_v37, 0 }
 0x45f   :  { %v573_v39 = vshrl.u32 %v571_v38, 16  ;;  %v572_v41 = vand.u32 65535, %v571_v38 }
 0x461   :  { %v575_v40 = vcvt.s32.f32 %v573_v39  ;;  %v574_v42 = vcvt.s32.f32 %v572_v41  ;;  %v2096_v39 = vld [vmem:[#allocation7 + $0x110] sm:$0xff]   ;;  %v2098_v41 = vld [vmem:[#allocation7 + $0x120] sm:$0xff]  }
 0x462   :  { %1967 = vmatpush3.bf16.msra.mxu0 %v2096_v39 }
 0x463   :  { %578 = vadd.xlane.f32.xlu1 %v575_v40  ;;  %1968 = vmatprep.subr.bf16.mxu0 %v2229_v0  ;;  %v2097_v40 = vld [vmem:[#allocation7 + $0x118] sm:$0xff]  }
 0x466   :  { %1969 = vmatpush3.bf16.msra.mxu0 %v2097_v40 }
 0x467   :  { %576 = vadd.xlane.f32.xlu1 %v574_v42  ;;  %1970 = vmatprep.subr.bf16.mxu0 %v2229_v0  ;;  %v2099_v42 = vld [vmem:[#allocation7 + $0x128] sm:$0xff]  }
 0x46a   :  { %1971 = vmatpush3.bf16.msra.mxu0 %v2098_v41 }
 0x46b   :  { %1972 = vmatprep.subr.bf16.mxu0 %v2229_v0 }
 0x46e   :  { %1973 = vmatpush3.bf16.msra.mxu0 %v2099_v42 }
 0x46f   :  { %1974 = vmatprep.subr.bf16.mxu0 %v2229_v0 }
 0x472   :  { %1975 = vmatpush3.bf16.msra.mxu0 %v2100_v43 }
 0x473   :  { %1976 = vmatprep.subr.bf16.mxu0 %v2229_v0 }
 0x476   :  { %1977 = vmatpush3.bf16.msra.mxu0 %v2101_v44 }
 0x477   :  { %2042 = vmatprep.subr.bf16.mxu0 %v2231_v63 }
 0x47b   :  { %v1022_v31 = vpop.f32.mrb[8].mxu0 }
 0x47c   :  { %v1940_v32 = vpop.f32.mrb[9].mxu0 }
 0x47d   :  { %v1025_v33 = vpop.f32.mrb[10].mxu0 }
 0x47e   :  { %v1941_v34 = vpop.f32.mrb[11].mxu0 }
 0x4f0   :  { %v579_v5 = vpop.xlane.xlu1 %578 }
 0x4f1   :  { %v581_v6 = vcvt.f32.s32 %v579_v5 }
 0x4f3   :  { %v582_v10 = vshll.u32 %v581_v6, 16 }
 0x4f4   :  { %v577_v9 = vpop.xlane.xlu1 %576 }
 0x4f5   :  { %v580_v14 = vcvt.f32.s32 %v577_v9 }
 0x4f7   :  { %v583_v15 = vadd.s32 %v582_v10, %v580_v14 }
 0x4f9   :  { %vm584_vm5 = vcmp.lt.s32.totalorder %v583_v15, 3 }
 0x4fa   :  { %v2425_v18 = vsel %vm584_vm5, %v583_v15, 3 }
 0x4fb   :  { %v586_v19 = vcvt.s32.f32 %v2425_v18 }
 0x4fd   :  { %vm591_vm6 = vcmp.eq.f32.partialorder %v1674_v16, %v586_v19 }
 0x4fe   :  { %v1675_v12 = vsel %vm591_vm6, 1.0, %v2229_v0 }
 0x4ff   :  { %v834_v21 = vmul.f32 %v1675_v12, %v2307_v11 }
 0x501   :  { %1920 = vmatmul.mubr.f32.vlgmr.msra.gmra.mrb[4].mxu1 %v834_v21 }
 0x502   :  { %1943 = vmatpush3.bf16.msra.mxu1 %v2079_v20  ;;  %1958 = vmatprep.mubr.msk.bf16.mxu1 %vm2230_vm0, %v2229_v0 }
 0x503   :  { %1944 = vmatprep.subr.bf16.mxu1 %v2229_v0 }
 0x506   :  { %1945 = vmatpush3.bf16.msra.mxu1 %v2081_v22  ;;  %v1744_v22 = vld [vmem:[#allocation5 + $0x6] ss:$0 sm:$0xff] }
 0x507   :  { %1946 = vmatprep.subr.bf16.mxu1 %v2229_v0 }
 0x50a   :  { %1947 = vmatpush3.bf16.msra.mxu1 %v2083_v23 }
 0x50b   :  { %1948 = vmatprep.subr.bf16.mxu1 %v2229_v0 }
 0x50e   :  { %1949 = vmatpush3.bf16.msra.mxu1 %v2085_v24 }
 0x50f   :  { %1950 = vmatprep.subr.bf16.mxu1 %v2229_v0 }
 0x512   :  { %1951 = vmatpush3.bf16.msra.mxu1 %v2087_v25 }
 0x513   :  { %1952 = vmatprep.subr.bf16.mxu1 %v2229_v0 }
 0x516   :  { %1953 = vmatpush3.bf16.msra.mxu1 %v2089_v26 }
 0x517   :  { %1954 = vmatprep.subr.bf16.mxu1 %v2229_v0 }
 0x51a   :  { %1955 = vmatpush3.bf16.msra.mxu1 %v2091_v27 }
 0x51b   :  { %1956 = vmatprep.subr.bf16.mxu1 %v2229_v0 }
 0x51e   :  { %1957 = vmatpush3.bf16.msra.mxu1 %v2093_v28 }
 0x51f   :  { %1982 = vmatprep.subr.bf16.mxu1 %v2229_v0 }
 0x5d4   :  { %v901_v35 = vpop.f32.mrb[4].mxu1 }
 0x5d5   :  { %v905_v37 = vpack.c.bf16 %v901_v35, %v901_v35  ;;  %v1921_v38 = vpop.f32.mrb[5].mxu1 }
 0x5d7   :  { %1959 = vmatmul.mubr.bf16.vlgmr.msra.gmra.mrb[8].mxu1 %v905_v37 }
 0x5d8   :  { %1998 = vmatprep.mubr.msk.bf16.mxu1 %vm2230_vm0, %v2229_v0  ;;  %1983 = vmatpush3.bf16.msra.mxu1 %v2102_v45 }
 0x5d9   :  { %1984 = vmatprep.subr.bf16.mxu1 %v2229_v0 }
 0x5dc   :  { %1985 = vmatpush3.bf16.msra.mxu1 %v2103_v46 }
 0x5dd   :  { %1986 = vmatprep.subr.bf16.mxu1 %v2229_v0 }
 0x5e0   :  { %1987 = vmatpush3.bf16.msra.mxu1 %v2104_v60  ;;  %v1747_v60 = vsel %vm1399_vm10, 1.0, %v2229_v0 }
 0x5e1   :  { %1988 = vmatprep.subr.bf16.mxu1 %v2229_v0 }
 0x5e4   :  { %1989 = vmatpush3.bf16.msra.mxu1 %v2105_v61  ;;  %v1447_v61 = vsub.f32 0.0, %v1747_v60 }
 0x5e5   :  { %1990 = vmatprep.subr.bf16.mxu1 %v2229_v0 }
 0x5e8   :  { %1991 = vmatpush3.bf16.msra.mxu1 %v2106_v62  ;;  %v2234_v62 = vmov 1.0  }
 0x5e9   :  { %1992 = vmatprep.subr.bf16.mxu1 %v2229_v0 }
 0x5ec   :  { %1993 = vmatpush3.bf16.msra.mxu1 %v2107_v1 }
 0x5ed   :  { %1994 = vmatprep.subr.bf16.mxu1 %v2229_v0 }
 0x6aa   :  { %v1110_v48 = vpop.f32.mrb[8].mxu1 }
 0x6ab   :  { %v1111_v49 = vadd.f32 %v1110_v48, %v1022_v31  ;;  %v1960_v50 = vpop.f32.mrb[9].mxu1 }
 0x6ac   :  { %v1113_v51 = vpop.f32.mrb[10].mxu1 }
 0x6ad   :  { %v1120_v52 = vadd.f32 %v1724_v47, %v1111_v49  ;;  %v1961_v53 = vpop.f32.mrb[11].mxu1  ;;  %v1745_v49 = vld [vmem:[#allocation5 + $0x7] ss:$0 sm:$0xff]  ;;  %v1746_v51 = vld [vmem:[#allocation5 + $0x8] ss:$0 sm:$0xff] }
 0x6af   :  { %v1122_v54 = vmin.f32 %v1120_v52, 0.0  ;;  %vm1121_vm7 = vcmp.gt.f32.partialorder %v1120_v52, 0.0 }
 0x6b1   :  { %v1123_v55 = vmul.f32 1.442695, %v1122_v54 }
 0x6b3   :  { %2118 = vpow2.f32 %v1123_v55 }
 0x6bd   :  { %v2119_v56 = vpop.eup %2118 }
 0x6be   :  { %v1725_v57 = vadd.f32 -1.0, %v2119_v56 }
 0x6c0   :  { %v1126_v58 = vsel %vm1121_vm7, %v1120_v52, %v1725_v57 }
 0x6c1   :  { %v1127_v59 = vpack.c.bf16 %v1126_v58, %v1126_v58 }
 0x6c3   :  { %1979 = vmatmul.mubr.bf16.vlgmr.msra.gmra.mrb[12].mxu0 %v1127_v59 }
 0x6c4   :  { %2043 = vmatpush3.bf16.msra.mxu0 %v2231_v63  ;;  %2008 = vmatprep.mubr.msk.f32.mxu0 %vm2230_vm0, %v2229_v0  ;;  %v2108_v63 = vld [vmem:[#allocation7 + $0x170] sm:$0xff]  }
 0x6c5   :  { %2006 = vmatprep.subr.mxu0 %v2229_v0  ;;  %1995 = vmatpush3.bf16.msra.mxu1 %v2108_v63 }
 0x6c6   :  { %1996 = vmatprep.subr.bf16.mxu1 %v2229_v0 }
 0x6c8   :  { %2007 = vmatpush3.msra.mxu0 %v1447_v61 }
 0x6c9   :  { %1997 = vmatpush3.bf16.msra.mxu1 %v2109_v2  ;;  %2011 = vmatprep.subr.mxu0 %v2229_v0 }
 0x6cb   :  { %2009 = vmatmul.mubr.f32.vlgmr.msra.gmra.mrb[6].mxu0 %v2307_v11 }
 0x6cc   :  { %2013 = vmatprep.mubr.msk.f32.mxu0 %vm2230_vm0, %v2229_v0  ;;  %2012 = vmatpush3.msk.msra.mxu0 %vm489_vm4, %v2234_v62  ;;  %vm1626_vm4 = vcmask 97280  }
 0x796   :  { %v1231_v4 = vpop.f32.mrb[12].mxu0 }
 0x797   :  { %v1232_v5 = vadd.f32 %v1726_v3, %v1231_v4  ;;  %v1980_v6 = vpop.f32.mrb[13].mxu0 }
 0x798   :  { %v1234_v9 = vpop.f32.mrb[14].mxu0 }
 0x799   :  { %v1238_v10 = vmin.f32 %v1232_v5, 0.0  ;;  %v1981_v14 = vpop.f32.mrb[15].mxu0  ;;  %vm1237_vm8 = vcmp.gt.f32.partialorder %v1232_v5, 0.0 }
 0x79b   :  { %v1239_v15 = vmul.f32 1.442695, %v1238_v10 }
 0x79d   :  { %2120 = vpow2.f32 %v1239_v15 }
 0x7a7   :  { %v2121_v16 = vpop.eup %2120 }
 0x7a8   :  { %v1735_v12 = vadd.f32 -1.0, %v2121_v16 }
 0x7aa   :  { %v1242_v20 = vsel %vm1237_vm8, %v1232_v5, %v1735_v12 }
 0x7ab   :  { %v1243_v21 = vpack.c.bf16 %v1242_v20, %v1242_v20 }
 0x7ad   :  { %1999 = vmatmul.mubr.bf16.vlgmr.msra.gmra.mrb[12].mxu1 %v1243_v21 }
 0x880   :  { %v1343_v23 = vpop.f32.mrb[12].mxu1 }
 0x881   :  { %v1353_v24 = vadd.f32 %v1744_v22, %v1343_v23  ;;  %v2000_v25 = vpop.f32.mrb[13].mxu1 }
 0x882   :  { %v1346_v26 = vpop.f32.mrb[14].mxu1 }
 0x883   :  { %v1355_v27 = vsel %vm1354_vm9, %v1353_v24, 0.0  ;;  %v2001_v28 = vpop.f32.mrb[15].mxu1 }
 0x884   :  { %v1356_v29 = vrot.slane %v1355_v27, 4 }
 0x886   :  { %v1357_v30 = vadd.f32 %v1356_v29, %v1355_v27 }
 0x888   :  { %v1358_v31 = vrot.slane %v1357_v30, 2 }
 0x88a   :  { %v1359_v32 = vadd.f32 %v1358_v31, %v1357_v30 }
 0x88c   :  { %v1360_v33 = vrot.slane %v1359_v32, 1 }
 0x88e   :  { %v1361_v34 = vadd.f32 %v1360_v33, %v1359_v32 }
 0x890   :  { %v1362_v35 = vmul.f32 0.125, %v1361_v34 }
 0x892   :  { %v1363_v37 = vsub.f32 %v1353_v24, %v1362_v35 }
 0x894   :  { %v1364_v38 = vmul.f32 %v1363_v37, %v1363_v37 }
 0x896   :  { %v1365_v39 = vsel %vm1354_vm9, %v1364_v38, 0.0 }
 0x897   :  { %v1366_v40 = vrot.slane %v1365_v39, 4 }
 0x899   :  { %v1367_v41 = vadd.f32 %v1366_v40, %v1365_v39 }
 0x89b   :  { %v1368_v42 = vrot.slane %v1367_v41, 2 }
 0x89d   :  { %v1369_v43 = vadd.f32 %v1368_v42, %v1367_v41 }
 0x89f   :  { %v1370_v44 = vrot.slane %v1369_v43, 1 }
 0x8a1   :  { %v1371_v45 = vadd.f32 %v1370_v44, %v1369_v43 }
 0x8a3   :  { %v1372_v46 = vmul.f32 0.125, %v1371_v45 }
 0x8a5   :  { %v1373_v47 = vadd.f32 1e-05, %v1372_v46 }
 0x8a7   :  { %2122 = vrsqrt.f32 %v1373_v47 }
 0x8b1   :  { %v2123_v48 = vpop.eup %2122 }
 0x8b2   :  { %v1375_v50 = vmul.f32 %v2123_v48, %v1363_v37 }
 0x8b4   :  { %v1380_v52 = vmul.f32 %v1745_v49, %v1375_v50 }
 0x8b6   :  { %v1385_v53 = vadd.f32 %v1746_v51, %v1380_v52 }
 0x8b8   :  { %v1386_v54 = vsel %vm1354_vm9, %v1385_v53, -inf }
 0x8b9   :  { %1387 = vmax.xlane.f32.xlu0 %v1386_v54 }
 0x946   :  { %v1388_v55 = vpop.xlane.xlu0 %1387 }
 0x947   :  { %v1389_v56 = vsub.f32 %v1385_v53, %v1388_v55 }
 0x949   :  { %v1390_v57 = vmul.f32 1.442695, %v1389_v56 }
 0x94b   :  { %2124 = vpow2.f32 %v1390_v57 }
 0x955   :  { %v2125_v58 = vpop.eup %2124 }
 0x956   :  { %v1392_v59 = vsel %vm1354_vm9, %v2125_v58, 0.0 }
 0x957   :  { %1393 = vadd.xlane.f32.xlu1 %v1392_v59 }
 0x9e4   :  { %v1394_v1 = vpop.xlane.xlu1 %1393 }
 0x9e5   :  { %2126 = vrcp.f32 %v1394_v1 }
 0x9ef   :  { %v2127_v63 = vpop.eup %2126 }
 0x9f0   :  { %v1396_v8 = vmul.f32 %v2127_v63, %v2125_v58 }
 0x9f2   :  { %2014 = vmatmul.mubr.msk.f32.vlgmr.msra.gmra.mrb[6].mxu0 %vm1354_vm9, %v1396_v8 }
 0xac5   :  { %v1600_v2 = vpop.f32.mrb[6].mxu0 }
 0xac6   :  { %vm1604_vm11 = vcmp.lt.f32.partialorder %v1600_v2, 0.0  ;;  %v2015_v3 = vpop.f32.mrb[7].mxu0 }
 0xac7   :  { %v1605_v4 = vsel %vm1604_vm11, 1, %v2233_v36 }
 0xac8   :  { %v1606_v11 = vsel %vm1354_vm9, %v1605_v4, 0 }
 0xac9   :  { %v1608_v5 = vshrl.u32 %v1606_v11, 16  ;;  %v1607_v0 = vand.u32 65535, %v1606_v11 }
 0xacb   :  { %v1610_v6 = vcvt.s32.f32 %v1608_v5  ;;  %v1609_v9 = vcvt.s32.f32 %v1607_v0 }
 0xacd   :  { %1613 = vadd.xlane.f32.xlu0 %v1610_v6  ;;  %1611 = vadd.xlane.f32.xlu1 %v1609_v9 }
 0xae3   :  { %1622 = vrot.lane.b32.xlu0 %v1396_v8, %s2228_s20 }
 0xb5a   :  { %v1614_v7 = vpop.xlane.xlu0 %1613  ;;  %v1612_v13 = vpop.xlane.xlu1 %1611 }
 0xb5b   :  { %v1616_v10 = vcvt.f32.s32 %v1614_v7  ;;  %v1615_v15 = vcvt.f32.s32 %v1612_v13 }
 0xb5d   :  { %v1617_v14 = vshll.u32 %v1616_v10, 16 }
 0xb5e   :  { %v1623_v16 = vpop.permute.xlu0 %1622 }
 0xb5f   :  { %v1618_v12 = vadd.s32 %v1617_v14, %v1615_v15  ;;  %v1625_v36 = vsel %vm292_vm2, %v2352_v17, %v1623_v16 }
 0xb60   :  { %v1627_v22 = vsel %vm1626_vm4, %v1625_v36, %v586_v19 }
 0xb61   :  { %vm1619_vm0 = vcmp.lt.s32.totalorder %v1618_v12, 7 }
 0xb62   :  { %v1620_v20 = vsel %vm1619_vm0, %v1618_v12, 7 }
 0xb63   :  { %v1621_v21 = vcvt.s32.f32 %v1620_v20 }
 0xb65   :  { %v1629_v23 = vsel %vm1628_vm12, %v1627_v22, %v1621_v21 }
 0xb66   :  { %v1631_v24 = vsel %vm1630_vm13, %v1629_v23, 0.0 }
 0xb67   :  { %1632 = vst [vmem:[#allocation8] sm:$0xff] %v1631_v24 }
 0xb68   :  { %2205 = shalt.err (!%p2202_p0)
}
 0xb69   :  { %s2206_s27 = scalar_lea.hbm %s2499_s3, 128 }
 0xb6a   :  { %p2207_p1 = scmp.ne.s32.totalorder %s2499_s3, %s2206_s27  ;;  %p2210_p2 = scmp.lt.u32.totalorder %s2206_s27, %s2499_s3 }
 0xb6c   :  { %p2212_p3 = pnand %p2210_p2, %p2207_p1 }
 0xb6e   :  { %2215 = shalt.err (!%p2212_p3)
}
 0xb6f   :  { %1642 = dma.vmem_to_hbm [thread:$0]  %s1640_s23, 128, %s2499_s3, [#allocation4]  }
 0xb70   :  { %2220 = dma.done.wait [#allocation4], 128  }
 0xb71   :  { %2221 = vsyncadd [#allocation4], 4294967168 }
 0xb72   :  { %1646 = vsyncpa [#allocation3], 1 }
 0xb73   :  { %1647 = vsyncpa [#allocation6], 1 }
 0xb74   :  { %1648 = vsyncpa [#allocation4], 1 }

</bundles_post_ra>
